<compile_context>
chip_gen: v7x
topology: tpu7x:2x2x1
jax: 0.10.0
libtpu: 0.0.40
codegen_flags: <defaults>
</compile_context>

<pallas_src>
import functools

import jax
import jax.numpy as jnp
from jax.experimental import pallas as pl
from jax.experimental.pallas import tpu as pltpu


def _round_up(x, m):
    return ((x + m - 1) // m) * m


def _cdiv(a, b):
    return -(-a // b)


def _vmem_capacity_bytes():
    """Per-core VMEM capacity (v7x: 64 MiB, v5e/v6e: 128 MiB); safe fallback."""
    try:
        info = pltpu.get_tpu_info()
        cap = getattr(info, "vmem_capacity_bytes", None)
        if cap:
            return int(cap)
    except Exception:
        pass
    return 64 * 1024 * 1024


# --------------------------------------------------------------------------- #
# Kernel
# --------------------------------------------------------------------------- #
def _make_gene_encoder_kernel(num_hidden_layers, compute_dtype):
    """Fused kernel: (Linear+ReLU)*num_hidden_layers -> fused [mu | logvar] head."""

    def kernel(*refs):
        # refs: x, (w_i, b_i) per hidden layer, w_head, b_head, out
        x_ref = refs[0]
        h = x_ref[...]
        if h.dtype != compute_dtype:
            h = h.astype(compute_dtype)          # cast in-kernel; no padded x copy in HBM
        idx = 1
        for _ in range(num_hidden_layers):
            w_ref, b_ref = refs[idx], refs[idx + 1]
            idx += 2
            h = jnp.dot(h, w_ref[...], preferred_element_type=jnp.float32)
            h = jnp.maximum(h + b_ref[...], 0.0)   # bias + ReLU stay in f32 (VPU)
            # TODO(synk): training-mode nn.Dropout (pltpu.prng_*) not implemented;
            # eval-mode dropout is the identity.
            h = h.astype(compute_dtype)
        w_ref, b_ref, out_ref = refs[idx], refs[idx + 1], refs[idx + 2]
        out = jnp.dot(h, w_ref[...], preferred_element_type=jnp.float32) + b_ref[...]
        out_ref[...] = out.astype(out_ref.dtype)

    return kernel


# --------------------------------------------------------------------------- #
# Parameter init (mimics torch.nn.Linear default init; weights [in, out])
# --------------------------------------------------------------------------- #
def init_gene_encoder_params(key, input_size, hidden_sizes, latent_size,
                             dtype=jnp.float32):
    params = {"hidden": []}
    num_units = [input_size] + list(hidden_sizes)
    keys = jax.random.split(key, 2 * len(hidden_sizes) + 4)
    k_idx = 0
    for i in range(1, len(num_units)):
        fan_in, fan_out = num_units[i - 1], num_units[i]
        bound = 1.0 / (fan_in ** 0.5)
        w = jax.random.uniform(keys[k_idx], (fan_in, fan_out), dtype,
                               minval=-bound, maxval=bound)
        b = jax.random.uniform(keys[k_idx + 1], (1, fan_out), dtype,
                               minval=-bound, maxval=bound)
        k_idx += 2
        params["hidden"].append((w, b))
    fan_in = hidden_sizes[-1]
    bound = 1.0 / (fan_in ** 0.5)
    params["w_mu"] = jax.random.uniform(keys[k_idx], (fan_in, latent_size), dtype,
                                        minval=-bound, maxval=bound)
    params["b_mu"] = jax.random.uniform(keys[k_idx + 1], (1, latent_size), dtype,
                                        minval=-bound, maxval=bound)
    params["w_lv"] = jax.random.uniform(keys[k_idx + 2], (fan_in, latent_size), dtype,
                                        minval=-bound, maxval=bound)
    params["b_lv"] = jax.random.uniform(keys[k_idx + 3], (1, latent_size), dtype,
                                        minval=-bound, maxval=bound)
    return params


# --------------------------------------------------------------------------- #
# One-time parameter preparation (pad / fuse / cast) -- hoisted out of forward
# --------------------------------------------------------------------------- #
def prepare_gene_encoder_params(params, compute_dtype=jnp.bfloat16,
                                lane_multiple=128):
    """Pads, fuses and casts all parameters once.

    Returns (flat, meta):
      flat : tuple of arrays in kernel-argument order
             (w_1, b_1, ..., w_L, b_L, w_head, b_head)
      meta : static config dict for the forward call.
    """
    hidden = params["hidden"]
    input_size = hidden[0][0].shape[0]
    latent_size = params["w_mu"].shape[1]

    def pad2d(a, rows, cols, dtype):
        a = a.astype(dtype)
        return jnp.pad(a, ((0, rows - a.shape[0]), (0, cols - a.shape[1])))

    flat = []
    prev = input_size                     # layer-1 K stays un-padded to match un-padded x
    max_width = 0
    for (w, b) in hidden:
        n_pad = _round_up(w.shape[1], lane_multiple)
        max_width = max(max_width, n_pad)
        flat.append(pad2d(w, prev, n_pad, compute_dtype))
        flat.append(pad2d(b, 1, n_pad, jnp.float32))
        prev = n_pad

    # Fused [mu | logvar] head: concat to 2*latent first, then ONE pad to 128.
    head_width = _round_up(2 * latent_size, lane_multiple)
    max_width = max(max_width, head_width)
    w_head = jnp.concatenate([params["w_mu"], params["w_lv"]], axis=1)
    b_head = jnp.concatenate([params["b_mu"], params["b_lv"]], axis=1)
    flat.append(pad2d(w_head, prev, head_width, compute_dtype))
    flat.append(pad2d(b_head, 1, head_width, jnp.float32))

    flat = tuple(jax.device_put(a) for a in flat)
    param_bytes = int(sum(a.size * a.dtype.itemsize for a in flat))
    meta = dict(num_hidden=len(hidden),
                input_size=int(input_size),
                latent_size=int(latent_size),
                head_width=int(head_width),
                max_width=int(max_width),
                param_bytes=param_bytes,
                compute_dtype=compute_dtype)
    return flat, meta


# --------------------------------------------------------------------------- #
# Forward
# --------------------------------------------------------------------------- #
@functools.partial(
    jax.jit,
    static_argnames=("num_hidden", "latent_size", "head_width", "block_batch",
                     "compute_dtype", "out_dtype", "vmem_limit_bytes"))
def _gene_encoder_forward(x, flat, *, num_hidden, latent_size, head_width,
                          block_batch, compute_dtype, out_dtype,
                          vmem_limit_bytes):
    batch, input_size = x.shape
    padded_batch = _round_up(batch, block_batch)
    if padded_batch != batch:
        x = jnp.pad(x, ((0, padded_batch - batch), (0, 0)))   # batch-axis pad only
    grid = (padded_batch // block_batch,)

    # x walks the batch; its block last dim equals the full (unpadded) input_size.
    in_specs = [pl.BlockSpec((block_batch, input_size), lambda i: (i, 0))]
    # Parameters: constant block index, single-buffered -> resident once in VMEM.
    for a in flat:
        in_specs.append(
            pl.BlockSpec(a.shape, lambda i: (0, 0),
                         pipeline_mode=pl.Buffered(1)))

    out_specs = pl.BlockSpec((block_batch, head_width), lambda i: (i, 0))
    out_shape = jax.ShapeDtypeStruct((padded_batch, head_width), out_dtype)

    out = pl.pallas_call(
        _make_gene_encoder_kernel(num_hidden, compute_dtype),
        grid=grid,
        in_specs=in_specs,
        out_specs=out_specs,
        out_shape=out_shape,
        compiler_params=pltpu.CompilerParams(
            dimension_semantics=("parallel",),
            vmem_limit_bytes=vmem_limit_bytes),
    )(x, *flat)

    mu = out[:batch, :latent_size]
    logvar = out[:batch, latent_size:2 * latent_size]
    return mu, logvar


def gene_encoder_forward(x, prepared, *, block_batch=512, out_dtype=None):
    """x: [batch, input_size] -> (mu, logvar): each [batch, latent_size]."""
    flat, meta = prepared
    compute_dtype = meta["compute_dtype"]
    out_dtype = out_dtype if out_dtype is not None else compute_dtype

    batch, input_size = x.shape
    assert input_size == meta["input_size"], "input_size mismatch with prepared params"

    x_bytes = jnp.dtype(x.dtype).itemsize
    out_bytes = jnp.dtype(out_dtype).itemsize
    head_width = meta["head_width"]
    max_width = meta["max_width"]
    param_bytes = meta["param_bytes"]

    # ---- batch-tile selection against a VMEM budget ---------------------------
    vmem_cap = _vmem_capacity_bytes()
    budget = int(vmem_cap * 0.75)

    bb = max(16, _round_up(min(block_batch, _round_up(batch, 16)), 16))
    # Keep >= 2 grid steps whenever the batch allows it (v7x 2-TC sharding).
    if batch > 16:
        bb = min(bb, _round_up(_cdiv(_round_up(batch, 16), 2), 16))

    def footprint(b):
        x_tile = 2 * b * input_size * x_bytes        # double-buffered x stream
        o_tile = 2 * b * head_width * out_bytes      # double-buffered output stream
        act = 2 * b * max_width * 4                  # f32 intermediates (estimate)
        return param_bytes + x_tile + o_tile + act

    while bb > 16 and footprint(bb) > budget:
        bb -= 16
    bb = max(16, bb)

    vmem_limit = min(vmem_cap - 4 * 1024 * 1024,
                     max(32 * 1024 * 1024, int(footprint(bb) * 1.25) + 4 * 1024 * 1024))

    return _gene_encoder_forward(
        x, flat,
        num_hidden=meta["num_hidden"],
        latent_size=meta["latent_size"],
        head_width=head_width,
        block_batch=int(bb),
        compute_dtype=compute_dtype,
        out_dtype=out_dtype,
        vmem_limit_bytes=int(vmem_limit))


# --------------------------------------------------------------------------- #
# Pure-JAX reference (matches the PyTorch forward in eval mode)
# --------------------------------------------------------------------------- #
def gene_encoder_reference(x, params):
    h = x.astype(jnp.float32)
    for (w, b) in params["hidden"]:
        h = jnp.maximum(h @ w + b, 0.0)
    mu = h @ params["w_mu"] + params["b_mu"]
    logvar = h @ params["w_lv"] + params["b_lv"]
    return mu, logvar


if __name__ == "__main__":
    key = jax.random.PRNGKey(0)
    k_param, k_input = jax.random.split(key)

    # Small config consistent with the module; dims deliberately not multiples
    # of 128 / the batch tile so the padding paths are exercised.
    input_size = 200
    hidden_sizes = [96, 64]
    latent_size = 16
    batch = 300

    params = init_gene_encoder_params(k_param, input_size, hidden_sizes, latent_size)
    x = jax.random.normal(k_input, (batch, input_size), dtype=jnp.float32)

    mu_ref, logvar_ref = gene_encoder_reference(x, params)

    # float32 compute path: must match the reference tightly.
    prep_f32 = prepare_gene_encoder_params(params, compute_dtype=jnp.float32)
    mu, logvar = gene_encoder_forward(x, prep_f32, out_dtype=jnp.float32)
    jax.block_until_ready((mu, logvar))
    assert mu.shape == (batch, latent_size) and logvar.shape == (batch, latent_size)
    assert jnp.allclose(mu, mu_ref, atol=1e-4, rtol=1e-4)
    assert jnp.allclose(logvar, logvar_ref, atol=1e-4, rtol=1e-4)

    # bfloat16 compute path (production default, MXU-friendly): looser tolerance.
    prep_bf16 = prepare_gene_encoder_params(params, compute_dtype=jnp.bfloat16)
    mu_bf, logvar_bf = gene_encoder_forward(x, prep_bf16)
    jax.block_until_ready((mu_bf, logvar_bf))
    assert mu_bf.shape == (batch, latent_size)
    assert jnp.allclose(mu_bf.astype(jnp.float32), mu_ref, atol=5e-2, rtol=5e-2)
    assert jnp.allclose(logvar_bf.astype(jnp.float32), logvar_ref, atol=5e-2, rtol=5e-2)

    print("KERNEL_OK")
</pallas_src>

<mosaic_0001>
module attributes {stable_mosaic.version = 11 : i64} {
  func.func @kernel(%arg0: i32, %arg1: memref<160x200xf32, #tpu.memory_space<vmem>>, %arg2: memref<200x128xf32, #tpu.memory_space<vmem>>, %arg3: memref<1x128xf32, #tpu.memory_space<vmem>>, %arg4: memref<128x128xf32, #tpu.memory_space<vmem>>, %arg5: memref<1x128xf32, #tpu.memory_space<vmem>>, %arg6: memref<128x128xf32, #tpu.memory_space<vmem>>, %arg7: memref<1x128xf32, #tpu.memory_space<vmem>>, %arg8: memref<160x128xf32, #tpu.memory_space<vmem>>) attributes {dimension_semantics = [#tpu.dimension_semantics<parallel>], iteration_bounds = array<i64: 2>, scalar_prefetch = 0 : i64, scratch_operands = 0 : i64, tpu.core_type = #tpu.core_type<tc>, window_params = [{transform_indices = @transform_0, window_bounds = array<i64: 160, 200>}, {pipeline_mode = #tpu.pipeline_mode<synchronous>, transform_indices = @transform_1, window_bounds = array<i64: 200, 128>}, {pipeline_mode = #tpu.pipeline_mode<synchronous>, transform_indices = @transform_2, window_bounds = array<i64: 1, 128>}, {pipeline_mode = #tpu.pipeline_mode<synchronous>, transform_indices = @transform_3, window_bounds = array<i64: 128, 128>}, {pipeline_mode = #tpu.pipeline_mode<synchronous>, transform_indices = @transform_4, window_bounds = array<i64: 1, 128>}, {pipeline_mode = #tpu.pipeline_mode<synchronous>, transform_indices = @transform_5, window_bounds = array<i64: 128, 128>}, {pipeline_mode = #tpu.pipeline_mode<synchronous>, transform_indices = @transform_6, window_bounds = array<i64: 1, 128>}, {transform_indices = @transform_7, window_bounds = array<i64: 160, 128>}]} {
    %c0 = arith.constant 0 : index
    %c0_0 = arith.constant 0 : index
    %0 = vector.load %arg1[%c0, %c0_0] : memref<160x200xf32, #tpu.memory_space<vmem>>, vector<160x200xf32>
    %c0_1 = arith.constant 0 : index
    %c0_2 = arith.constant 0 : index
    %1 = vector.load %arg2[%c0_1, %c0_2] : memref<200x128xf32, #tpu.memory_space<vmem>>, vector<200x128xf32>
    %cst = arith.constant dense<0.000000e+00> : vector<160x128xf32>
    %2 = tpu.matmul %0, %1, %cst {dimension_numbers = #tpu.dot_dimension_numbers<[1], [0], [0], [1], [0, 0, 1, 1], [], []>} : vector<160x200xf32>, vector<200x128xf32>, vector<160x128xf32> -> vector<160x128xf32>
    %c0_3 = arith.constant 0 : index
    %c0_4 = arith.constant 0 : index
    %3 = vector.load %arg3[%c0_3, %c0_4] : memref<1x128xf32, #tpu.memory_space<vmem>>, vector<1x128xf32>
    %4 = vector.broadcast %3 : vector<1x128xf32> to vector<160x128xf32>
    %5 = arith.addf %2, %4 : vector<160x128xf32>
    %cst_5 = arith.constant 0.000000e+00 : f32
    %6 = vector.broadcast %cst_5 : f32 to vector<160x128xf32>
    %7 = arith.maximumf %5, %6 : vector<160x128xf32>
    %c0_6 = arith.constant 0 : index
    %c0_7 = arith.constant 0 : index
    %8 = vector.load %arg4[%c0_6, %c0_7] : memref<128x128xf32, #tpu.memory_space<vmem>>, vector<128x128xf32>
    %cst_8 = arith.constant dense<0.000000e+00> : vector<160x128xf32>
    %9 = tpu.matmul %7, %8, %cst_8 {dimension_numbers = #tpu.dot_dimension_numbers<[1], [0], [0], [1], [0, 0, 1, 1], [], []>} : vector<160x128xf32>, vector<128x128xf32>, vector<160x128xf32> -> vector<160x128xf32>
    %c0_9 = arith.constant 0 : index
    %c0_10 = arith.constant 0 : index
    %10 = vector.load %arg5[%c0_9, %c0_10] : memref<1x128xf32, #tpu.memory_space<vmem>>, vector<1x128xf32>
    %11 = vector.broadcast %10 : vector<1x128xf32> to vector<160x128xf32>
    %12 = arith.addf %9, %11 : vector<160x128xf32>
    %cst_11 = arith.constant 0.000000e+00 : f32
    %13 = vector.broadcast %cst_11 : f32 to vector<160x128xf32>
    %14 = arith.maximumf %12, %13 : vector<160x128xf32>
    %c0_12 = arith.constant 0 : index
    %c0_13 = arith.constant 0 : index
    %15 = vector.load %arg6[%c0_12, %c0_13] : memref<128x128xf32, #tpu.memory_space<vmem>>, vector<128x128xf32>
    %cst_14 = arith.constant dense<0.000000e+00> : vector<160x128xf32>
    %16 = tpu.matmul %14, %15, %cst_14 {dimension_numbers = #tpu.dot_dimension_numbers<[1], [0], [0], [1], [0, 0, 1, 1], [], []>} : vector<160x128xf32>, vector<128x128xf32>, vector<160x128xf32> -> vector<160x128xf32>
    %c0_15 = arith.constant 0 : index
    %c0_16 = arith.constant 0 : index
    %17 = vector.load %arg7[%c0_15, %c0_16] : memref<1x128xf32, #tpu.memory_space<vmem>>, vector<1x128xf32>
    %18 = vector.broadcast %17 : vector<1x128xf32> to vector<160x128xf32>
    %19 = arith.addf %16, %18 : vector<160x128xf32>
    %c0_17 = arith.constant 0 : index
    %c0_18 = arith.constant 0 : index
    %20 = vector.load %arg8[%c0_17, %c0_18] : memref<160x128xf32, #tpu.memory_space<vmem>>, vector<160x128xf32>
    tpu.vector_store %arg8[%c0_17, %c0_18], %19 {strides = array<i32>} : memref<160x128xf32, #tpu.memory_space<vmem>>, vector<160x128xf32>,
    return
  }
  func.func @transform_0(%arg0: i32) -> (i32, i32) {
    %c0_i32 = arith.constant 0 : i32
    %c0_i32_0 = arith.constant 0 : i32
    return %arg0, %c0_i32 : i32, i32
  }
  func.func @transform_1(%arg0: i32) -> (i32, i32) {
    %c0_i32 = arith.constant 0 : i32
    %c0_i32_0 = arith.constant 0 : i32
    %c0_i32_1 = arith.constant 0 : i32
    return %c0_i32, %c0_i32_0 : i32, i32
  }
  func.func @transform_2(%arg0: i32) -> (i32, i32) {
    %c0_i32 = arith.constant 0 : i32
    %c0_i32_0 = arith.constant 0 : i32
    %c0_i32_1 = arith.constant 0 : i32
    return %c0_i32, %c0_i32_0 : i32, i32
  }
  func.func @transform_3(%arg0: i32) -> (i32, i32) {
    %c0_i32 = arith.constant 0 : i32
    %c0_i32_0 = arith.constant 0 : i32
    %c0_i32_1 = arith.constant 0 : i32
    return %c0_i32, %c0_i32_0 : i32, i32
  }
  func.func @transform_4(%arg0: i32) -> (i32, i32) {
    %c0_i32 = arith.constant 0 : i32
    %c0_i32_0 = arith.constant 0 : i32
    %c0_i32_1 = arith.constant 0 : i32
    return %c0_i32, %c0_i32_0 : i32, i32
  }
  func.func @transform_5(%arg0: i32) -> (i32, i32) {
    %c0_i32 = arith.constant 0 : i32
    %c0_i32_0 = arith.constant 0 : i32
    %c0_i32_1 = arith.constant 0 : i32
    return %c0_i32, %c0_i32_0 : i32, i32
  }
  func.func @transform_6(%arg0: i32) -> (i32, i32) {
    %c0_i32 = arith.constant 0 : i32
    %c0_i32_0 = arith.constant 0 : i32
    %c0_i32_1 = arith.constant 0 : i32
    return %c0_i32, %c0_i32_0 : i32, i32
  }
  func.func @transform_7(%arg0: i32) -> (i32, i32) {
    %c0_i32 = arith.constant 0 : i32
    %c0_i32_0 = arith.constant 0 : i32
    return %arg0, %c0_i32 : i32, i32
  }
}

</mosaic_0001>

<bundles_post_ra>
// kernel: _gene_encoder_forward.1
= control target key start
LH: loop header
LB: loop body
LE: loop exit
PB: predicated region body
PF: predicated region fallthrough
CT: control target
= control target key end

     0   :  { %s1465_s24 = smov 0   ;;  %s1806_s0 = inlined_call_operand.vmem [shape: f32[320,200], index: 0, kind: input, shape index: {}]   ;;  %s1807_s1 = inlined_call_operand.vmem [shape: f32[200,128], index: 1, kind: input, shape index: {}]   ;;  %s1808_s2 = inlined_call_operand.vmem [shape: f32[1,128], index: 2, kind: input, shape index: {}]   ;;  %s1809_s3 = inlined_call_operand.vmem [shape: f32[128,128], index: 3, kind: input, shape index: {}]   ;;  %s1810_s4 = inlined_call_operand.vmem [shape: f32[1,128], index: 4, kind: input, shape index: {}]   ;;  %s1811_s5 = inlined_call_operand.vmem [shape: f32[128,128], index: 5, kind: input, shape index: {}]   ;;  %s1812_s6 = inlined_call_operand.vmem [shape: f32[1,128], index: 6, kind: input, shape index: {}]   ;;  %s1813_s7 = inlined_call_operand.vmem [shape: f32[320,128], index: 7, kind: output, shape index: {}]  }
   0x1 LB: > { %s1075_s25 = sadd.s32 4294967295, %s1421_s24   ;;  %p1079_p0 = scmp.ge.s32.totalorder %s1421_s24, 1  ;;  %s1421_s24 = sphi %s1465_s24, %s17_s24  }
   0x2   : > { %p239_p1 = scmp.lt.s32.totalorder %s1421_s24, 3 }
   0x4   : > { %p240_p2 = pnand %p1079_p0, %p239_p1 }
   0x5   : > { %v325_v0 = vld [vmem:[%s1807_s1] sm:$0xff] (!%p240_p2)  ;;  %v326_v1 = vld [vmem:[%s1807_s1 + $0x8] sm:$0xff] (!%p240_p2)  ;;  %v327_v2 = vld [vmem:[%s1807_s1 + $0x10] sm:$0xff] (!%p240_p2)  ;;  %s272_s9 = smul.u32 (!%p240_p2), 20, %s1075_s25  ;;  %v1423_v3 = vmov (!%p240_p2), 0.0|0.0   ;;  %vm357_vm0 = vcmask (!%p240_p2), 588800  }
   0x6   : > { %243 = sbr.rel (%p240_p2) target bundleno = 783 (0x30f), region = 48  ;;  %1305 = vmatprep.subr.bf16.mxu0 (!%p240_p2), %v1423_v3  ;;  %v1306_v4 = vpack.c.bf16 (!%p240_p2), %v326_v1, %v325_v0  ;;  %v328_v5 = vld [vmem:[%s1807_s1 + $0x18] sm:$0xff] (!%p240_p2)  ;;  %v329_v7 = vld [vmem:[%s1807_s1 + $0x20] sm:$0xff] (!%p240_p2)  ;;  %v330_v8 = vld [vmem:[%s1807_s1 + $0x28] sm:$0xff] (!%p240_p2)  ;;  %v1424_v56 = vmov (!%p240_p2), 0.0  }
   0x7   : > { %p273_p3 = scmp.lt.s32.totalorder (!%p240_p2), %s272_s9, 39  ;;  %v1309_v6 = vpack.c.bf16 (!%p240_p2), %v328_v5, %v327_v2  ;;  %v1312_v9 = vpack.c.bf16 (!%p240_p2), %v330_v8, %v329_v7  ;;  %v331_v10 = vld [vmem:[%s1807_s1 + $0x30] sm:$0xff] (!%p240_p2)  ;;  %v332_v11 = vld [vmem:[%s1807_s1 + $0x38] sm:$0xff] (!%p240_p2)  ;;  %v333_v14 = vld [vmem:[%s1807_s1 + $0x40] sm:$0xff] (!%p240_p2) }
   0x8   : > { %1307 = vmatpush1.bf16.msra.mxu0 (!%p240_p2), %v1306_v4  ;;  %v1315_v13 = vpack.c.bf16 (!%p240_p2), %v332_v11, %v331_v10  ;;  %v334_v15 = vld [vmem:[%s1807_s1 + $0x48] sm:$0xff] (!%p240_p2)  ;;  %v335_v17 = vld [vmem:[%s1807_s1 + $0x50] sm:$0xff] (!%p240_p2)  ;;  %v336_v18 = vld [vmem:[%s1807_s1 + $0x58] sm:$0xff] (!%p240_p2) }
   0x9   : > { %1308 = vmatprep.subr.bf16.mxu0 (!%p240_p2), %v1423_v3  ;;  %v1318_v16 = vpack.c.bf16 (!%p240_p2), %v334_v15, %v333_v14  ;;  %v1321_v19 = vpack.c.bf16 (!%p240_p2), %v336_v18, %v335_v17  ;;  %v337_v20 = vld [vmem:[%s1807_s1 + $0x60] sm:$0xff] (!%p240_p2)  ;;  %v338_v21 = vld [vmem:[%s1807_s1 + $0x68] sm:$0xff] (!%p240_p2)  ;;  %v605_v24 = vld [vmem:[%s1809_s3 + $0x10] sm:$0xff] (!%p240_p2) }
   0xa   : > { %v603_v22 = vld [vmem:[%s1809_s3] sm:$0xff] (!%p240_p2)  ;;  %v604_v23 = vld [vmem:[%s1809_s3 + $0x8] sm:$0xff] (!%p240_p2)  ;;  %v606_v25 = vld [vmem:[%s1809_s3 + $0x18] sm:$0xff] (!%p240_p2)  ;;  %v1324_v26 = vpack.c.bf16 (!%p240_p2), %v338_v21, %v337_v20 }
   0xb   : > { %v339_v27 = vld [vmem:[%s1807_s1 + $0x70] sm:$0xff] (!%p240_p2)  ;;  %v1341_v28 = vpack.c.bf16 (!%p240_p2), %v604_v23, %v603_v22  ;;  %v1345_v29 = vpack.c.bf16 (!%p240_p2), %v606_v25, %v605_v24  ;;  %v340_v30 = vld [vmem:[%s1807_s1 + $0x78] sm:$0xff] (!%p240_p2)  ;;  %v607_v31 = vld [vmem:[%s1809_s3 + $0x20] sm:$0xff] (!%p240_p2) }
   0xc   : > { %1310 = vmatpush1.bf16.msra.mxu0 (!%p240_p2), %v1309_v6  ;;  %v608_v32 = vld [vmem:[%s1809_s3 + $0x28] sm:$0xff] (!%p240_p2)  ;;  %v1327_v33 = vpack.c.bf16 (!%p240_p2), %v340_v30, %v339_v27  ;;  %v341_v34 = vld [vmem:[%s1807_s1 + $0x80] sm:$0xff] (!%p240_p2)  ;;  %v609_v37 = vld [vmem:[%s1809_s3 + $0x30] sm:$0xff] (!%p240_p2) }
   0xd   : > { %s1815_s9 = smov (!%p273_p3, %s272_s9), 39  ;;  %1311 = vmatprep.subr.bf16.mxu0 %v1423_v3  ;;  %1342 = vmatprep.subr.bf16.mxu1 %v1341_v28  ;;  %v1349_v35 = vpack.c.bf16 %v608_v32, %v607_v31  ;;  %v342_v36 = vld [vmem:[%s1807_s1 + $0x88] sm:$0xff]  ;;  %v610_v38 = vld [vmem:[%s1809_s3 + $0x38] sm:$0xff]  ;;  %v343_v40 = vld [vmem:[%s1807_s1 + $0x90] sm:$0xff] }
   0xe   : > { %s1108_s16 = sshll.u32 %s1815_s9, 4  ;;  %1344 = vmatpush3.bf16.msra.mxu1 %v1341_v28  ;;  %v1330_v39 = vpack.c.bf16 %v342_v36, %v341_v34  ;;  %v1353_v41 = vpack.c.bf16 %v610_v38, %v609_v37  ;;  %v344_v42 = vld [vmem:[%s1807_s1 + $0x98] sm:$0xff]  ;;  %v611_v43 = vld [vmem:[%s1809_s3 + $0x40] sm:$0xff]  ;;  %v612_v44 = vld [vmem:[%s1809_s3 + $0x48] sm:$0xff]  ;;  %s1082_s25 = sshll.u32 %s1815_s9, 3 }
   0xf   : > { %s1499_s19 = scalar_lea.vmem %s1806_s0, %s1108_s16  ;;  %1346 = vmatprep.subr.bf16.mxu1 %v1345_v29  ;;  %v1333_v45 = vpack.c.bf16 %v344_v42, %v343_v40  ;;  %v345_v46 = vld [vmem:[%s1807_s1 + $0xa0] sm:$0xff]  ;;  %v1357_v47 = vpack.c.bf16 %v612_v44, %v611_v43  ;;  %v346_v48 = vld [vmem:[%s1807_s1 + $0xa8] sm:$0xff]  ;;  %v613_v49 = vld [vmem:[%s1809_s3 + $0x50] sm:$0xff]  ;;  %s1781_s30 = scalar_lea.vmem %s1813_s7, %s1082_s25 }
  0x10   : > { %v286_v12 = vld [vmem:[%s1499_s19 + $0x8] sm:$0xff]  ;;  %1313 = vmatpush1.bf16.msra.mxu0 %v1312_v9  ;;  %v614_v50 = vld [vmem:[%s1809_s3 + $0x58] sm:$0xff]  ;;  %v1336_v51 = vpack.c.bf16 %v346_v48, %v345_v46  ;;  %v347_v53 = vld [vmem:[%s1807_s1 + $0xb0] sm:$0xff] }
  0x11   : > { %1084 = vmatprep.mubr.msk.f32.mxu0 %vm357_vm0, %v286_v12  ;;  %1314 = vmatprep.subr.bf16.mxu0 %v1423_v3  ;;  %v1361_v52 = vpack.c.bf16 %v614_v50, %v613_v49  ;;  %v348_v54 = vld [vmem:[%s1807_s1 + $0xb8] sm:$0xff]  ;;  %v349_v57 = vld [vmem:[%s1807_s1 + $0xc0] sm:$0xff]  ;;  %v287_v60 = vld [vmem:[%s1499_s19 + $0x10] sm:$0xff] }
  0x12   : > { %1348 = vmatpush3.bf16.msra.mxu1 %v1345_v29  ;;  %v1339_v55 = vpack.c.bf16 %v348_v54, %v347_v53  ;;  %v285_v58 = vld [vmem:[%s1499_s19] sm:$0xff]  ;;  %v288_v59 = vld [vmem:[%s1499_s19 + $0x18] sm:$0xff]  ;;  %v290_v61 = vld [vmem:[%s1499_s19 + $0x28] sm:$0xff] }
  0x13   : > { %1350 = vmatprep.subr.bf16.mxu1 %v1349_v35  ;;  %v289_v62 = vld [vmem:[%s1499_s19 + $0x20] sm:$0xff]  ;;  %v292_v63 = vld [vmem:[%s1499_s19 + $0x38] sm:$0xff]  ;;  %v291_v0 = vld [vmem:[%s1499_s19 + $0x30] sm:$0xff] }
  0x14   : > { %1316 = vmatpush1.bf16.msra.mxu0 %v1315_v13  ;;  %v294_v1 = vld [vmem:[%s1499_s19 + $0x48] sm:$0xff]  ;;  %v293_v2 = vld [vmem:[%s1499_s19 + $0x40] sm:$0xff]  ;;  %v295_v4 = vld [vmem:[%s1499_s19 + $0x50] sm:$0xff] }
  0x15   : > { %1317 = vmatprep.subr.bf16.mxu0 %v1423_v3  ;;  %v298_v5 = vld [vmem:[%s1499_s19 + $0x68] sm:$0xff]  ;;  %v297_v6 = vld [vmem:[%s1499_s19 + $0x60] sm:$0xff]  ;;  %v300_v7 = vld [vmem:[%s1499_s19 + $0x78] sm:$0xff] }
  0x16   : > { %1352 = vmatpush3.bf16.msra.mxu1 %v1349_v35  ;;  %v299_v8 = vld [vmem:[%s1499_s19 + $0x70] sm:$0xff]  ;;  %v302_v9 = vld [vmem:[%s1499_s19 + $0x88] sm:$0xff]  ;;  %v301_v10 = vld [vmem:[%s1499_s19 + $0x80] sm:$0xff] }
  0x17   : > { %1354 = vmatprep.subr.bf16.mxu1 %v1353_v41  ;;  %v304_v11 = vld [vmem:[%s1499_s19 + $0x98] sm:$0xff]  ;;  %v303_v12 = vld [vmem:[%s1499_s19 + $0x90] sm:$0xff]  ;;  %v306_v13 = vld [vmem:[%s1499_s19 + $0xa8] sm:$0xff] }
  0x18   : > { %1319 = vmatpush1.bf16.msra.mxu0 %v1318_v16  ;;  %v305_v14 = vld [vmem:[%s1499_s19 + $0xa0] sm:$0xff]  ;;  %v308_v15 = vld [vmem:[%s1499_s19 + $0xb8] sm:$0xff]  ;;  %v307_v16 = vld [vmem:[%s1499_s19 + $0xb0] sm:$0xff] }
  0x19   : > { %1320 = vmatprep.subr.bf16.mxu0 %v1423_v3  ;;  %v310_v17 = vld [vmem:[%s1499_s19 + $0xc8] sm:$0xff]  ;;  %v309_v18 = vld [vmem:[%s1499_s19 + $0xc0] sm:$0xff]  ;;  %v311_v20 = vld [vmem:[%s1499_s19 + $0xd0] sm:$0xff] }
  0x1a   : > { %1356 = vmatpush3.bf16.msra.mxu1 %v1353_v41  ;;  %v314_v21 = vld [vmem:[%s1499_s19 + $0xe8] sm:$0xff]  ;;  %v313_v22 = vld [vmem:[%s1499_s19 + $0xe0] sm:$0xff]  ;;  %v316_v23 = vld [vmem:[%s1499_s19 + $0xf8] sm:$0xff] }
  0x1b   : > { %1358 = vmatprep.subr.bf16.mxu1 %v1357_v47  ;;  %v315_v24 = vld [vmem:[%s1499_s19 + $0xf0] sm:$0xff]  ;;  %v318_v25 = vld [vmem:[%s1499_s19 + $0x108] sm:$0xff]  ;;  %v320_v27 = vld [vmem:[%s1499_s19 + $0x118] sm:$0xff] }
  0x1c   : > { %1322 = vmatpush1.bf16.msra.mxu0 %v1321_v19  ;;  %v312_v19 = vld [vmem:[%s1499_s19 + $0xd8] sm:$0xff]  ;;  %v319_v28 = vld [vmem:[%s1499_s19 + $0x110] sm:$0xff]  ;;  %v322_v29 = vld [vmem:[%s1499_s19 + $0x128] sm:$0xff] }
  0x1d   : > { %1323 = vmatprep.subr.bf16.mxu0 %v1423_v3  ;;  %v321_v30 = vld [vmem:[%s1499_s19 + $0x120] sm:$0xff]  ;;  %v324_v31 = vld [vmem:[%s1499_s19 + $0x138] sm:$0xff]  ;;  %v323_v32 = vld [vmem:[%s1499_s19 + $0x130] sm:$0xff] }
  0x1e   : > { %1360 = vmatpush3.bf16.msra.mxu1 %v1357_v47  ;;  %v616_v34 = vld [vmem:[%s1809_s3 + $0x68] sm:$0xff]  ;;  %v617_v36 = vld [vmem:[%s1809_s3 + $0x70] sm:$0xff]  ;;  %v618_v37 = vld [vmem:[%s1809_s3 + $0x78] sm:$0xff] }
  0x1f   : > { %1362 = vmatprep.subr.bf16.mxu1 %v1361_v52  ;;  %v1369_v38 = vpack.c.bf16 %v618_v37, %v617_v36  ;;  %v812_v40 = vld [vmem:[%s1811_s5 + $0x8] sm:$0xff]  ;;  %v1685_v42 = vld [vmem:[%s1808_s2] ss:$0 sm:$0xff]  ;;  %v813_v48 = vld [vmem:[%s1811_s5 + $0x10] sm:$0xff] }
  0x20   : > { %1325 = vmatpush1.bf16.msra.mxu0 %v1324_v26  ;;  %v317_v26 = vld [vmem:[%s1499_s19 + $0x100] sm:$0xff]  ;;  %v814_v49 = vld [vmem:[%s1811_s5 + $0x18] sm:$0xff] }
  0x21   : > { %1326 = vmatprep.subr.bf16.mxu0 %v1423_v3  ;;  %v1377_v53 = vpack.c.bf16 %v814_v49, %v813_v48 }
  0x22   : > { %1364 = vmatpush3.bf16.msra.mxu1 %v1361_v52 }
  0x24   : > { %1328 = vmatpush1.bf16.msra.mxu0 %v1327_v33  ;;  %v615_v33 = vld [vmem:[%s1809_s3 + $0x60] sm:$0xff] }
  0x25   : > { %1329 = vmatprep.subr.bf16.mxu0 %v1423_v3  ;;  %v1365_v35 = vpack.c.bf16 %v616_v34, %v615_v33 }
  0x27   : > { %1366 = vmatprep.subr.bf16.mxu1 %v1365_v35 }
  0x28   : > { %1331 = vmatpush1.bf16.msra.mxu0 %v1330_v39  ;;  %1368 = vmatpush3.bf16.msra.mxu1 %v1365_v35  ;;  %v811_v39 = vld [vmem:[%s1811_s5] sm:$0xff] }
  0x29   : > { %1332 = vmatprep.subr.bf16.mxu0 %v1423_v3  ;;  %1370 = vmatprep.subr.bf16.mxu1 %v1369_v38  ;;  %v1373_v41 = vpack.c.bf16 %v812_v40, %v811_v39 }
  0x2c   : > { %1334 = vmatpush1.bf16.msra.mxu0 %v1333_v45  ;;  %1372 = vmatpush3.bf16.msra.mxu1 %v1369_v38 }
  0x2d   : > { %1335 = vmatprep.subr.bf16.mxu0 %v1423_v3  ;;  %1374 = vmatprep.subr.bf16.mxu1 %v1373_v41 }
  0x30   : > { %1337 = vmatpush1.bf16.msra.mxu0 %v1336_v51 }
  0x31   : > { %1338 = vmatprep.subr.bf16.mxu0 %v1423_v3  ;;  %v296_v3 = vld [vmem:[%s1499_s19 + $0x58] sm:$0xff] }
  0x34   : > { %1340 = vmatpush1.bf16.msra.mxu0 %v1339_v55  ;;  %v815_v55 = vld [vmem:[%s1811_s5 + $0x20] sm:$0xff] }
  0x35   : > { %466 = vmatprep.subr.mxu0 %v1424_v56  ;;  %v816_v56 = vld [vmem:[%s1811_s5 + $0x28] sm:$0xff] }
  0x38   : > { %467 = vmatpush1.msra.mxu0 %v349_v57 }
  0x39   : > { %483 = vmatmul.mubr.f32.vlgmr.msra.gmra.mrb[0].mxu0 %v285_v58 }
  0x3a   : > { %1085 = vmatprep.mubr.msk.f32.mxu0 %vm357_vm0, %v288_v59 }
  0x3d   : > { %488 = vmatmul.mubr.f32.gmra.mrb[2].mxu0 %v287_v60  ;;  %v1381_v60 = vpack.c.bf16 %v816_v56, %v815_v55 }
  0x3e   : > { %1086 = vmatprep.mubr.msk.f32.mxu0 %vm357_vm0, %v290_v61 }
  0x41   : > { %493 = vmatmul.mubr.f32.gmra.mrb[4].mxu0 %v289_v62  ;;  %v817_v62 = vld [vmem:[%s1811_s5 + $0x30] sm:$0xff] }
  0x42   : > { %1087 = vmatprep.mubr.msk.f32.mxu0 %vm357_vm0, %v292_v63  ;;  %v818_v63 = vld [vmem:[%s1811_s5 + $0x38] sm:$0xff] }
  0x45   : > { %498 = vmatmul.mubr.f32.gmra.mrb[6].mxu0 %v291_v0 }
  0x46   : > { %1088 = vmatprep.mubr.msk.f32.mxu0 %vm357_vm0, %v294_v1 }
  0x49   : > { %503 = vmatmul.mubr.f32.gmra.mrb[8].mxu0 %v293_v2 }
  0x4a   : > { %1089 = vmatprep.mubr.msk.f32.mxu0 %vm357_vm0, %v296_v3  ;;  %v1385_v3 = vpack.c.bf16 %v818_v63, %v817_v62 }
  0x4d   : > { %508 = vmatmul.mubr.f32.gmra.mrb[10].mxu0 %v295_v4 }
  0x4e   : > { %1090 = vmatprep.mubr.msk.f32.mxu0 %vm357_vm0, %v298_v5  ;;  %v819_v5 = vld [vmem:[%s1811_s5 + $0x40] sm:$0xff] }
  0x51   : > { %513 = vmatmul.mubr.f32.gmra.mrb[12].mxu0 %v297_v6  ;;  %v820_v6 = vld [vmem:[%s1811_s5 + $0x48] sm:$0xff] }
  0x52   : > { %1091 = vmatprep.mubr.msk.f32.mxu0 %vm357_vm0, %v300_v7 }
  0x55   : > { %518 = vmatmul.mubr.f32.gmra.mrb[14].mxu0 %v299_v8 }
  0x56   : > { %1092 = vmatprep.mubr.msk.f32.mxu0 %vm357_vm0, %v302_v9 }
  0x59   : > { %523 = vmatmul.mubr.f32.gmra.mrb[16].mxu0 %v301_v10  ;;  %v1389_v10 = vpack.c.bf16 %v820_v6, %v819_v5 }
  0x5a   : > { %1093 = vmatprep.mubr.msk.f32.mxu0 %vm357_vm0, %v304_v11 }
  0x5d   : > { %528 = vmatmul.mubr.f32.gmra.mrb[18].mxu0 %v303_v12  ;;  %v821_v12 = vld [vmem:[%s1811_s5 + $0x50] sm:$0xff] }
  0x5e   : > { %1094 = vmatprep.mubr.msk.f32.mxu0 %vm357_vm0, %v306_v13  ;;  %v822_v13 = vld [vmem:[%s1811_s5 + $0x58] sm:$0xff] }
  0x61   : > { %533 = vmatmul.mubr.f32.gmra.mrb[20].mxu0 %v305_v14 }
  0x62   : > { %1095 = vmatprep.mubr.msk.f32.mxu0 %vm357_vm0, %v308_v15 }
  0x65   : > { %538 = vmatmul.mubr.f32.gmra.mrb[22].mxu0 %v307_v16 }
  0x66   : > { %1096 = vmatprep.mubr.msk.f32.mxu0 %vm357_vm0, %v310_v17  ;;  %v1393_v17 = vpack.c.bf16 %v822_v13, %v821_v12 }
  0x69   : > { %543 = vmatmul.mubr.f32.gmra.mrb[24].mxu0 %v309_v18 }
  0x6a   : > { %1097 = vmatprep.mubr.msk.f32.mxu0 %vm357_vm0, %v312_v19  ;;  %v823_v19 = vld [vmem:[%s1811_s5 + $0x60] sm:$0xff] }
  0x6d   : > { %548 = vmatmul.mubr.f32.gmra.mrb[26].mxu0 %v311_v20  ;;  %v824_v20 = vld [vmem:[%s1811_s5 + $0x68] sm:$0xff] }
  0x6e   : > { %1098 = vmatprep.mubr.msk.f32.mxu0 %vm357_vm0, %v314_v21 }
  0x71   : > { %553 = vmatmul.mubr.f32.gmra.mrb[28].mxu0 %v313_v22 }
  0x72   : > { %1099 = vmatprep.mubr.msk.f32.mxu0 %vm357_vm0, %v316_v23 }
  0x75   : > { %558 = vmatmul.mubr.f32.gmra.mrb[30].mxu0 %v315_v24  ;;  %v1397_v24 = vpack.c.bf16 %v824_v20, %v823_v19 }
  0x76   : > { %1100 = vmatprep.mubr.msk.f32.mxu0 %vm357_vm0, %v318_v25 }
  0x79   : > { %563 = vmatmul.mubr.f32.gmra.mrb[32].mxu0 %v317_v26 }
  0x7a   : > { %1101 = vmatprep.mubr.msk.f32.mxu0 %vm357_vm0, %v320_v27 }
  0x7d   : > { %568 = vmatmul.mubr.f32.gmra.mrb[34].mxu0 %v319_v28 }
  0x7e   : > { %1102 = vmatprep.mubr.msk.f32.mxu0 %vm357_vm0, %v322_v29 }
  0x81   : > { %573 = vmatmul.mubr.f32.gmra.mrb[36].mxu0 %v321_v30 }
  0x82   : > { %1103 = vmatprep.mubr.msk.f32.mxu0 %vm357_vm0, %v324_v31 }
  0x85   : > { %578 = vmatmul.mubr.f32.gmra.mrb[38].mxu0 %v323_v32 }
 0x10c   : > { %v484_v43 = vpop.f32.mrb[0].mxu0 }
 0x10d   : > { %v486_v44 = vpop.f32.mrb[1].mxu0  ;;  %v485_v45 = vadd.f32 %v1685_v42, %v484_v43 }
 0x10f   : > { %v583_v46 = vmax.f32 %v485_v45, 0.0 }
 0x110   : > { %v489_v47 = vpop.f32.mrb[2].mxu0 }
 0x111   : > { %v490_v50 = vadd.f32 %v1685_v42, %v489_v47  ;;  %v491_v51 = vpop.f32.mrb[3].mxu0  ;;  %1213 = vmatprep.mubr.f32.mxu1 %v583_v46 }
 0x113   : > { %v584_v52 = vmax.f32 %v490_v50, 0.0 }
 0x114   : > { %v494_v54 = vpop.f32.mrb[4].mxu0 }
 0x115   : > { %v495_v57 = vadd.f32 %v1685_v42, %v494_v54  ;;  %v496_v58 = vpop.f32.mrb[5].mxu0  ;;  %1214 = vmatmul.mubr.f32.vlgmr.msra.gmra.mrb[0].mxu1 %v584_v52 }
 0x116   : > { %1376 = vmatpush3.bf16.msra.mxu1 %v1373_v41 }
 0x117   : > { %v585_v59 = vmax.f32 %v495_v57, 0.0  ;;  %1378 = vmatprep.subr.bf16.mxu1 %v1377_v53 }
 0x118   : > { %v499_v61 = vpop.f32.mrb[6].mxu0 }
 0x119   : > { %v500_v0 = vadd.f32 %v1685_v42, %v499_v61  ;;  %v501_v1 = vpop.f32.mrb[7].mxu0  ;;  %1216 = vmatprep.mubr.f32.mxu1 %v585_v59 }
 0x11a   : > { %1380 = vmatpush3.bf16.msra.mxu1 %v1377_v53 }
 0x11b   : > { %v586_v2 = vmax.f32 %v500_v0, 0.0  ;;  %1382 = vmatprep.subr.bf16.mxu1 %v1381_v60 }
 0x11c   : > { %v504_v4 = vpop.f32.mrb[8].mxu0 }
 0x11d   : > { %v505_v7 = vadd.f32 %v1685_v42, %v504_v4  ;;  %v506_v8 = vpop.f32.mrb[9].mxu0  ;;  %1217 = vmatmul.mubr.f32.gmra.mrb[2].mxu1 %v586_v2 }
 0x11e   : > { %1384 = vmatpush3.bf16.msra.mxu1 %v1381_v60 }
 0x11f   : > { %v587_v9 = vmax.f32 %v505_v7, 0.0  ;;  %1386 = vmatprep.subr.bf16.mxu1 %v1385_v3 }
 0x120   : > { %v509_v11 = vpop.f32.mrb[10].mxu0 }
 0x121   : > { %v510_v14 = vadd.f32 %v1685_v42, %v509_v11  ;;  %v511_v15 = vpop.f32.mrb[11].mxu0  ;;  %1219 = vmatprep.mubr.f32.mxu1 %v587_v9 }
 0x122   : > { %1388 = vmatpush3.bf16.msra.mxu1 %v1385_v3  ;;  %v826_v15 = vld [vmem:[%s1811_s5 + $0x78] sm:$0xff] }
 0x123   : > { %v588_v16 = vmax.f32 %v510_v14, 0.0  ;;  %1390 = vmatprep.subr.bf16.mxu1 %v1389_v10  ;;  %v825_v14 = vld [vmem:[%s1811_s5 + $0x70] sm:$0xff] }
 0x124   : > { %v514_v18 = vpop.f32.mrb[12].mxu0 }
 0x125   : > { %v515_v21 = vadd.f32 %v1685_v42, %v514_v18  ;;  %v516_v22 = vpop.f32.mrb[13].mxu0  ;;  %1220 = vmatmul.mubr.f32.gmra.mrb[4].mxu1 %v588_v16  ;;  %v1401_v16 = vpack.c.bf16 %v826_v15, %v825_v14  ;;  %v1105_v14 = vld [vmem:[%s1812_s6] ss:$0 sm:$0xff] }
 0x126   : > { %1392 = vmatpush3.bf16.msra.mxu1 %v1389_v10 }
 0x127   : > { %v589_v23 = vmax.f32 %v515_v21, 0.0  ;;  %1394 = vmatprep.subr.bf16.mxu1 %v1393_v17 }
 0x128   : > { %v519_v25 = vpop.f32.mrb[14].mxu0 }
 0x129   : > { %v520_v26 = vadd.f32 %v1685_v42, %v519_v25  ;;  %v521_v27 = vpop.f32.mrb[15].mxu0  ;;  %1222 = vmatprep.mubr.f32.mxu1 %v589_v23 }
 0x12a   : > { %1396 = vmatpush3.bf16.msra.mxu1 %v1393_v17  ;;  %v1752_v17 = vld [vmem:[%s1810_s4] ss:$0 sm:$0xff] }
 0x12b   : > { %v590_v28 = vmax.f32 %v520_v26, 0.0  ;;  %1398 = vmatprep.subr.bf16.mxu1 %v1397_v24 }
 0x12c   : > { %v524_v29 = vpop.f32.mrb[16].mxu0 }
 0x12d   : > { %v525_v30 = vadd.f32 %v1685_v42, %v524_v29  ;;  %v526_v31 = vpop.f32.mrb[17].mxu0  ;;  %1223 = vmatmul.mubr.f32.gmra.mrb[6].mxu1 %v590_v28 }
 0x12e   : > { %1400 = vmatpush3.bf16.msra.mxu1 %v1397_v24 }
 0x12f   : > { %v591_v32 = vmax.f32 %v525_v30, 0.0  ;;  %1402 = vmatprep.subr.bf16.mxu1 %v1401_v16 }
 0x130   : > { %v529_v33 = vpop.f32.mrb[18].mxu0 }
 0x131   : > { %v530_v34 = vadd.f32 %v1685_v42, %v529_v33  ;;  %v531_v35 = vpop.f32.mrb[19].mxu0  ;;  %1225 = vmatprep.mubr.f32.mxu1 %v591_v32 }
 0x132   : > { %1404 = vmatpush3.bf16.msra.mxu1 %v1401_v16 }
 0x133   : > { %v592_v36 = vmax.f32 %v530_v34, 0.0 }
 0x134   : > { %v534_v37 = vpop.f32.mrb[20].mxu0 }
 0x135   : > { %v535_v38 = vadd.f32 %v1685_v42, %v534_v37  ;;  %v536_v39 = vpop.f32.mrb[21].mxu0  ;;  %1226 = vmatmul.mubr.f32.gmra.mrb[8].mxu1 %v592_v36 }
 0x137   : > { %v593_v40 = vmax.f32 %v535_v38, 0.0 }
 0x138   : > { %v539_v41 = vpop.f32.mrb[22].mxu0 }
 0x139   : > { %v540_v43 = vadd.f32 %v1685_v42, %v539_v41  ;;  %v541_v44 = vpop.f32.mrb[23].mxu0  ;;  %1228 = vmatprep.mubr.f32.mxu1 %v593_v40 }
 0x13b   : > { %v594_v45 = vmax.f32 %v540_v43, 0.0 }
 0x13c   : > { %v544_v46 = vpop.f32.mrb[24].mxu0 }
 0x13d   : > { %v545_v47 = vadd.f32 %v1685_v42, %v544_v46  ;;  %v546_v48 = vpop.f32.mrb[25].mxu0  ;;  %1229 = vmatmul.mubr.f32.gmra.mrb[10].mxu1 %v594_v45 }
 0x13f   : > { %v595_v49 = vmax.f32 %v545_v47, 0.0 }
 0x140   : > { %v549_v50 = vpop.f32.mrb[26].mxu0 }
 0x141   : > { %v550_v51 = vadd.f32 %v1685_v42, %v549_v50  ;;  %v551_v52 = vpop.f32.mrb[27].mxu0  ;;  %1231 = vmatprep.mubr.f32.mxu1 %v595_v49 }
 0x143   : > { %v596_v53 = vmax.f32 %v550_v51, 0.0 }
 0x144   : > { %v554_v54 = vpop.f32.mrb[28].mxu0 }
 0x145   : > { %v555_v55 = vadd.f32 %v1685_v42, %v554_v54  ;;  %v556_v56 = vpop.f32.mrb[29].mxu0  ;;  %1232 = vmatmul.mubr.f32.gmra.mrb[12].mxu1 %v596_v53 }
 0x147   : > { %v597_v57 = vmax.f32 %v555_v55, 0.0 }
 0x148   : > { %v559_v58 = vpop.f32.mrb[30].mxu0 }
 0x149   : > { %v560_v59 = vadd.f32 %v1685_v42, %v559_v58  ;;  %v561_v60 = vpop.f32.mrb[31].mxu0  ;;  %1234 = vmatprep.mubr.f32.mxu1 %v597_v57 }
 0x14b   : > { %v598_v61 = vmax.f32 %v560_v59, 0.0 }
 0x14c   : > { %v564_v62 = vpop.f32.mrb[32].mxu0 }
 0x14d   : > { %v565_v63 = vadd.f32 %v1685_v42, %v564_v62  ;;  %v566_v0 = vpop.f32.mrb[33].mxu0  ;;  %1235 = vmatmul.mubr.f32.gmra.mrb[14].mxu1 %v598_v61 }
 0x14f   : > { %v599_v1 = vmax.f32 %v565_v63, 0.0 }
 0x150   : > { %v569_v2 = vpop.f32.mrb[34].mxu0 }
 0x151   : > { %v570_v3 = vadd.f32 %v1685_v42, %v569_v2  ;;  %v571_v4 = vpop.f32.mrb[35].mxu0  ;;  %1237 = vmatprep.mubr.f32.mxu1 %v599_v1 }
 0x153   : > { %v600_v5 = vmax.f32 %v570_v3, 0.0 }
 0x154   : > { %v574_v6 = vpop.f32.mrb[36].mxu0 }
 0x155   : > { %v575_v7 = vadd.f32 %v1685_v42, %v574_v6  ;;  %v576_v8 = vpop.f32.mrb[37].mxu0  ;;  %1238 = vmatmul.mubr.f32.gmra.mrb[16].mxu1 %v600_v5 }
 0x157   : > { %v601_v9 = vmax.f32 %v575_v7, 0.0 }
 0x158   : > { %v579_v10 = vpop.f32.mrb[38].mxu0 }
 0x159   : > { %v580_v11 = vadd.f32 %v1685_v42, %v579_v10  ;;  %v581_v12 = vpop.f32.mrb[39].mxu0  ;;  %1240 = vmatprep.mubr.f32.mxu1 %v601_v9 }
 0x15b   : > { %v602_v13 = vmax.f32 %v580_v11, 0.0 }
 0x15d   : > { %1241 = vmatmul.mubr.f32.gmra.mrb[18].mxu1 %v602_v13 }
 0x1e8   : > { %v1215_v42 = vpop.f32.mrb[0].mxu1 }
 0x1e9   : > { %v698_v18 = vadd.f32 %v1215_v42, %v1752_v17  ;;  %v692_v19 = vpop.f32.mrb[1].mxu1 }
 0x1ea   : > { %v693_v20 = vadd.f32 %v1752_v17, %v692_v19 }
 0x1eb   : > { %v792_v22 = vmax.f32 %v698_v18, 0.0 }
 0x1ec   : > { %v791_v21 = vmax.f32 %v693_v20, 0.0 }
 0x1ee   : > { %1275 = vmatprep.mubr.f32.mxu1 %v791_v21 }
 0x1ef   : > { %1276 = vmatmul.mubr.f32.vlgmr.msra.gmra.mrb[20].mxu1 %v792_v22 }
 0x1f0   : > { %v1218_v23 = vpop.f32.mrb[2].mxu1 }
 0x1f1   : > { %v708_v24 = vadd.f32 %v1218_v23, %v1752_v17  ;;  %v702_v25 = vpop.f32.mrb[3].mxu1 }
 0x1f2   : > { %v703_v26 = vadd.f32 %v1752_v17, %v702_v25 }
 0x1f3   : > { %v794_v28 = vmax.f32 %v708_v24, 0.0 }
 0x1f4   : > { %v793_v27 = vmax.f32 %v703_v26, 0.0 }
 0x1f6   : > { %1278 = vmatprep.mubr.f32.mxu1 %v793_v27 }
 0x1f7   : > { %1279 = vmatmul.mubr.f32.gmra.mrb[22].mxu1 %v794_v28 }
 0x1f8   : > { %v1221_v29 = vpop.f32.mrb[4].mxu1 }
 0x1f9   : > { %v718_v30 = vadd.f32 %v1221_v29, %v1752_v17  ;;  %v712_v31 = vpop.f32.mrb[5].mxu1 }
 0x1fa   : > { %v713_v32 = vadd.f32 %v1752_v17, %v712_v31 }
 0x1fb   : > { %v796_v34 = vmax.f32 %v718_v30, 0.0 }
 0x1fc   : > { %v795_v33 = vmax.f32 %v713_v32, 0.0 }
 0x1fe   : > { %1281 = vmatprep.mubr.f32.mxu1 %v795_v33 }
 0x1ff   : > { %1282 = vmatmul.mubr.f32.gmra.mrb[24].mxu1 %v796_v34 }
 0x200   : > { %v1224_v35 = vpop.f32.mrb[6].mxu1 }
 0x201   : > { %v728_v36 = vadd.f32 %v1224_v35, %v1752_v17  ;;  %v722_v37 = vpop.f32.mrb[7].mxu1 }
 0x202   : > { %v723_v38 = vadd.f32 %v1752_v17, %v722_v37 }
 0x203   : > { %v798_v40 = vmax.f32 %v728_v36, 0.0 }
 0x204   : > { %v797_v39 = vmax.f32 %v723_v38, 0.0 }
 0x206   : > { %1284 = vmatprep.mubr.f32.mxu1 %v797_v39 }
 0x207   : > { %1285 = vmatmul.mubr.f32.gmra.mrb[26].mxu1 %v798_v40 }
 0x208   : > { %v1227_v41 = vpop.f32.mrb[8].mxu1 }
 0x209   : > { %v738_v43 = vadd.f32 %v1227_v41, %v1752_v17  ;;  %v732_v44 = vpop.f32.mrb[9].mxu1 }
 0x20a   : > { %v733_v45 = vadd.f32 %v1752_v17, %v732_v44 }
 0x20b   : > { %v800_v47 = vmax.f32 %v738_v43, 0.0 }
 0x20c   : > { %v799_v46 = vmax.f32 %v733_v45, 0.0 }
 0x20e   : > { %1287 = vmatprep.mubr.f32.mxu1 %v799_v46 }
 0x20f   : > { %1288 = vmatmul.mubr.f32.gmra.mrb[28].mxu1 %v800_v47 }
 0x210   : > { %v1230_v48 = vpop.f32.mrb[10].mxu1 }
 0x211   : > { %v748_v49 = vadd.f32 %v1230_v48, %v1752_v17  ;;  %v742_v50 = vpop.f32.mrb[11].mxu1 }
 0x212   : > { %v743_v51 = vadd.f32 %v1752_v17, %v742_v50 }
 0x213   : > { %v802_v53 = vmax.f32 %v748_v49, 0.0 }
 0x214   : > { %v801_v52 = vmax.f32 %v743_v51, 0.0 }
 0x216   : > { %1290 = vmatprep.mubr.f32.mxu1 %v801_v52 }
 0x217   : > { %1291 = vmatmul.mubr.f32.gmra.mrb[30].mxu1 %v802_v53 }
 0x218   : > { %v1233_v54 = vpop.f32.mrb[12].mxu1 }
 0x219   : > { %v758_v55 = vadd.f32 %v1233_v54, %v1752_v17  ;;  %v752_v56 = vpop.f32.mrb[13].mxu1 }
 0x21a   : > { %v753_v57 = vadd.f32 %v1752_v17, %v752_v56 }
 0x21b   : > { %v804_v59 = vmax.f32 %v758_v55, 0.0 }
 0x21c   : > { %v803_v58 = vmax.f32 %v753_v57, 0.0 }
 0x21e   : > { %1293 = vmatprep.mubr.f32.mxu1 %v803_v58 }
 0x21f   : > { %1294 = vmatmul.mubr.f32.gmra.mrb[32].mxu1 %v804_v59 }
 0x220   : > { %v1236_v60 = vpop.f32.mrb[14].mxu1 }
 0x221   : > { %v768_v61 = vadd.f32 %v1236_v60, %v1752_v17  ;;  %v762_v62 = vpop.f32.mrb[15].mxu1 }
 0x222   : > { %v763_v63 = vadd.f32 %v1752_v17, %v762_v62 }
 0x223   : > { %v806_v1 = vmax.f32 %v768_v61, 0.0 }
 0x224   : > { %v805_v0 = vmax.f32 %v763_v63, 0.0 }
 0x226   : > { %1296 = vmatprep.mubr.f32.mxu1 %v805_v0 }
 0x227   : > { %1297 = vmatmul.mubr.f32.gmra.mrb[34].mxu1 %v806_v1 }
 0x228   : > { %v1239_v2 = vpop.f32.mrb[16].mxu1 }
 0x229   : > { %v778_v3 = vadd.f32 %v1239_v2, %v1752_v17  ;;  %v772_v4 = vpop.f32.mrb[17].mxu1 }
 0x22a   : > { %v773_v5 = vadd.f32 %v1752_v17, %v772_v4 }
 0x22b   : > { %v808_v7 = vmax.f32 %v778_v3, 0.0 }
 0x22c   : > { %v807_v6 = vmax.f32 %v773_v5, 0.0 }
 0x22e   : > { %1299 = vmatprep.mubr.f32.mxu1 %v807_v6 }
 0x22f   : > { %1300 = vmatmul.mubr.f32.gmra.mrb[36].mxu1 %v808_v7 }
 0x230   : > { %v1242_v8 = vpop.f32.mrb[18].mxu1 }
 0x231   : > { %v788_v9 = vadd.f32 %v1242_v8, %v1752_v17  ;;  %v782_v10 = vpop.f32.mrb[19].mxu1 }
 0x232   : > { %v783_v11 = vadd.f32 %v1752_v17, %v782_v10 }
 0x233   : > { %v810_v13 = vmax.f32 %v788_v9, 0.0 }
 0x234   : > { %v809_v12 = vmax.f32 %v783_v11, 0.0 }
 0x236   : > { %1302 = vmatprep.mubr.f32.mxu1 %v809_v12 }
 0x237   : > { %1303 = vmatmul.mubr.f32.gmra.mrb[38].mxu1 %v810_v13 }
 0x2c2   : > { %v1277_v15 = vpop.f32.mrb[20].mxu1 }
 0x2c3   : > { %v906_v16 = vadd.f32 %v1277_v15, %v1105_v14  ;;  %v900_v17 = vpop.f32.mrb[21].mxu1 }
 0x2c4   : > { %v901_v42 = vadd.f32 %v1105_v14, %v900_v17 }
 0x2c5   : > { %1000 = vst [vmem:[%s1781_s30 + $0x8] sm:$0xff] %v906_v16 }
 0x2c6   : > { %999 = vst [vmem:[%s1781_s30] sm:$0xff] %v901_v42 }
 0x2ca   : > { %v1280_v18 = vpop.f32.mrb[22].mxu1 }
 0x2cb   : > { %v916_v19 = vadd.f32 %v1280_v18, %v1105_v14  ;;  %v910_v20 = vpop.f32.mrb[23].mxu1 }
 0x2cc   : > { %v911_v21 = vadd.f32 %v1105_v14, %v910_v20 }
 0x2cd   : > { %1002 = vst [vmem:[%s1781_s30 + $0x18] sm:$0xff] %v916_v19 }
 0x2ce   : > { %1001 = vst [vmem:[%s1781_s30 + $0x10] sm:$0xff] %v911_v21 }
 0x2d2   : > { %v1283_v22 = vpop.f32.mrb[24].mxu1 }
 0x2d3   : > { %v926_v23 = vadd.f32 %v1283_v22, %v1105_v14  ;;  %v920_v24 = vpop.f32.mrb[25].mxu1 }
 0x2d4   : > { %v921_v25 = vadd.f32 %v1105_v14, %v920_v24 }
 0x2d5   : > { %1004 = vst [vmem:[%s1781_s30 + $0x28] sm:$0xff] %v926_v23 }
 0x2d6   : > { %1003 = vst [vmem:[%s1781_s30 + $0x20] sm:$0xff] %v921_v25 }
 0x2da   : > { %v1286_v26 = vpop.f32.mrb[26].mxu1 }
 0x2db   : > { %v936_v27 = vadd.f32 %v1286_v26, %v1105_v14  ;;  %v930_v28 = vpop.f32.mrb[27].mxu1 }
 0x2dc   : > { %v931_v29 = vadd.f32 %v1105_v14, %v930_v28 }
 0x2dd   : > { %1006 = vst [vmem:[%s1781_s30 + $0x38] sm:$0xff] %v936_v27 }
 0x2de   : > { %1005 = vst [vmem:[%s1781_s30 + $0x30] sm:$0xff] %v931_v29 }
 0x2e2   : > { %v1289_v30 = vpop.f32.mrb[28].mxu1 }
 0x2e3   : > { %v946_v31 = vadd.f32 %v1289_v30, %v1105_v14  ;;  %v940_v32 = vpop.f32.mrb[29].mxu1 }
 0x2e4   : > { %v941_v33 = vadd.f32 %v1105_v14, %v940_v32 }
 0x2e5   : > { %1008 = vst [vmem:[%s1781_s30 + $0x48] sm:$0xff] %v946_v31 }
 0x2e6   : > { %1007 = vst [vmem:[%s1781_s30 + $0x40] sm:$0xff] %v941_v33 }
 0x2ea   : > { %v1292_v34 = vpop.f32.mrb[30].mxu1 }
 0x2eb   : > { %v956_v35 = vadd.f32 %v1292_v34, %v1105_v14  ;;  %v950_v36 = vpop.f32.mrb[31].mxu1 }
 0x2ec   : > { %v951_v37 = vadd.f32 %v1105_v14, %v950_v36 }
 0x2ed   : > { %1010 = vst [vmem:[%s1781_s30 + $0x58] sm:$0xff] %v956_v35 }
 0x2ee   : > { %1009 = vst [vmem:[%s1781_s30 + $0x50] sm:$0xff] %v951_v37 }
 0x2f2   : > { %v1295_v38 = vpop.f32.mrb[32].mxu1 }
 0x2f3   : > { %v966_v39 = vadd.f32 %v1295_v38, %v1105_v14  ;;  %v960_v40 = vpop.f32.mrb[33].mxu1 }
 0x2f4   : > { %v961_v41 = vadd.f32 %v1105_v14, %v960_v40 }
 0x2f5   : > { %1012 = vst [vmem:[%s1781_s30 + $0x68] sm:$0xff] %v966_v39 }
 0x2f6   : > { %1011 = vst [vmem:[%s1781_s30 + $0x60] sm:$0xff] %v961_v41 }
 0x2fa   : > { %v1298_v43 = vpop.f32.mrb[34].mxu1 }
 0x2fb   : > { %v976_v44 = vadd.f32 %v1298_v43, %v1105_v14  ;;  %v970_v45 = vpop.f32.mrb[35].mxu1 }
 0x2fc   : > { %v971_v46 = vadd.f32 %v1105_v14, %v970_v45 }
 0x2fd   : > { %1014 = vst [vmem:[%s1781_s30 + $0x78] sm:$0xff] %v976_v44 }
 0x2fe   : > { %1013 = vst [vmem:[%s1781_s30 + $0x70] sm:$0xff] %v971_v46 }
 0x302   : > { %v1301_v47 = vpop.f32.mrb[36].mxu1 }
 0x303   : > { %v986_v48 = vadd.f32 %v1301_v47, %v1105_v14  ;;  %v980_v49 = vpop.f32.mrb[37].mxu1 }
 0x304   : > { %v981_v50 = vadd.f32 %v1105_v14, %v980_v49 }
 0x305   : > { %1016 = vst [vmem:[%s1781_s30 + $0x88] sm:$0xff] %v986_v48 }
 0x306   : > { %1015 = vst [vmem:[%s1781_s30 + $0x80] sm:$0xff] %v981_v50 }
 0x30a   : > { %v1304_v51 = vpop.f32.mrb[38].mxu1 }
 0x30b   : > { %v996_v52 = vadd.f32 %v1304_v51, %v1105_v14  ;;  %v990_v53 = vpop.f32.mrb[39].mxu1 }
 0x30c   : > { %v991_v54 = vadd.f32 %v1105_v14, %v990_v53 }
 0x30d   : > { %1018 = vst [vmem:[%s1781_s30 + $0x98] sm:$0xff] %v996_v52 }
 0x30e   : > { %1017 = vst [vmem:[%s1781_s30 + $0x90] sm:$0xff] %v991_v54 }
 0x30f PF: > { %s17_s24 = sadd.s32 1, %s1421_s24  }
 0x310   : > { %p14_p4 = scmp.ge.s32.totalorder %s17_s24, 4  }
 0x312   :  { %16 = sbr.rel (!%p14_p4) target bundleno = 1 (0x1), region = 78 }

</bundles_post_ra>
